<compile_context>
chip_gen: v7x
topology: tpu7x:2x2x1
jax: 0.10.0
libtpu: 0.0.40
codegen_flags: <defaults>
</compile_context>

<pallas_src>
import math
import functools

import jax
import jax.numpy as jnp
from jax import lax
from jax.experimental import pallas as pl
from jax.experimental.pallas import tpu as pltpu


def _arcface_kernel(labels_ref, x_ref, w_ref, group_ref, out_ref,
                    m_scr, l_scr, t_scr, *,
                    cos_m, sin_m, theta, sinmm, scale):
    c = pl.program_id(1)
    nc = pl.num_programs(1)
    tB = x_ref.shape[0]
    tC = w_ref.shape[0]

    @pl.when(c == 0)
    def _init():
        m_scr[...] = jnp.full((tB, 1), -jnp.inf, dtype=jnp.float32)
        l_scr[...] = jnp.zeros((tB, 1), dtype=jnp.float32)
        t_scr[...] = jnp.zeros((tB, 1), dtype=jnp.float32)

    # ---- F.normalize(embeddings) along E (eps=1e-12) via rsqrt (EUP).
    x = x_ref[...]
    x_n = x * lax.rsqrt(jnp.maximum(jnp.sum(x * x, axis=-1, keepdims=True), 1e-24))
    x_b = x_n.astype(jnp.bfloat16)

    # ---- fused F.normalize(weight) over the within-group (C0) axis.
    # group_ref is a 0/1 membership matrix: ssq[r, e] = sum over the C0 rows of r's
    # group of w^2.  hi/lo bf16 split keeps the MXU group-sum ~f32 accurate.
    w = w_ref[...]                                   # (tC, E) raw weight rows
    wsq = w * w
    hi = wsq.astype(jnp.bfloat16)
    lo = (wsq - hi.astype(jnp.float32)).astype(jnp.bfloat16)
    g = group_ref[...]                               # (tC, tC) bf16, exact 0/1
    gdims = (((1,), (0,)), ((), ()))
    ssq = (lax.dot_general(g, hi, gdims, preferred_element_type=jnp.float32) +
           lax.dot_general(g, lo, gdims, preferred_element_type=jnp.float32))
    w_b = (w * lax.rsqrt(jnp.maximum(ssq, 1e-24))).astype(jnp.bfloat16)

    # ---- cosine logits: bf16 operands, f32 accumulation (native MXU path).
    logits = lax.dot_general(x_b, w_b, (((1,), (1,)), ((), ())),
                             preferred_element_type=jnp.float32)  # (tB, tC)

    lab = labels_ref[...]                                          # (tB, 1) int32
    col = lax.broadcasted_iota(jnp.int32, (tB, tC), 1) + c * tC
    is_target = col == lab          # label == -1 never matches (col >= 0)

    # ---- ArcFace margin, computed only on the per-row target column.
    tgt = jnp.sum(jnp.where(is_target, logits, 0.0), axis=-1, keepdims=True)
    has_t = jnp.sum(is_target.astype(jnp.float32), axis=-1, keepdims=True) > 0.0
    sin_t = jnp.sqrt(jnp.maximum(1.0 - tgt * tgt, 0.0))
    cos_tm = tgt * cos_m - sin_t * sin_m
    final_t = jnp.where(tgt > theta, cos_tm, tgt - sinmm)   # easy_margin = False
    logits = jnp.where(is_target, final_t, logits) * scale

    # ---- online log-sum-exp across class tiles.
    m_prev = m_scr[...]
    m_new = jnp.maximum(m_prev, jnp.max(logits, axis=-1, keepdims=True))
    alpha = jnp.exp(m_prev - m_new)
    l_scr[...] = alpha * l_scr[...] + jnp.sum(jnp.exp(logits - m_new),
                                              axis=-1, keepdims=True)
    m_scr[...] = m_new
    t_scr[...] = t_scr[...] + jnp.where(has_t, final_t * scale, 0.0)

    @pl.when(c == nc - 1)
    def _finalize():
        lse = m_scr[...] + jnp.log(l_scr[...])
        valid = (labels_ref[...] != -1).astype(jnp.float32)
        # (tB, 1) lane-sparse store, but written only once per batch tile.
        out_ref[...] = (lse - t_scr[...]) * valid


def _pick_tile(total, cap, mult):
    """Largest t <= cap with t % mult == 0 and total % t == 0; else full extent."""
    t = (min(cap, total) // mult) * mult
    while t >= mult:
        if total % t == 0:
            return t
        t -= mult
    return total


def arcface_group_loss(x, labels, weight, *, scale, margin):
    cos_m = math.cos(margin)
    sin_m = math.sin(margin)
    theta = math.cos(math.pi - margin)
    sinmm = math.sin(math.pi - margin) * margin

    C1, C0, E = weight.shape
    C = C1 * C0
    B = x.shape[0]

    # TODO(synk): F.linear with a 3-D weight is invalid in PyTorch (weight.t()
    # needs <= 2 dims); we mirror the evident intent by flattening the
    # (num_classes[-1], num_classes[0]) axes into one class axis (metadata-only
    # reshape, no extra HBM pass).
    w2 = weight.reshape(C, E)
    labels2 = labels.reshape(B, 1).astype(jnp.int32)

    tB = _pick_tile(B, 128, 8)
    tC = _pick_tile(C, 512, math.lcm(8, C0))   # group-aligned, sublane-aligned
    nB, nC = B // tB, C // tC

    # 0/1 group-membership matrix for the in-kernel F.normalize(weight, dim=1)
    # reduction; tiny (tC x tC) constant, kept resident (constant index_map).
    gidx = jnp.arange(tC, dtype=jnp.int32) // C0
    group_mat = (gidx[:, None] == gidx[None, :]).astype(jnp.bfloat16)

    kernel = functools.partial(
        _arcface_kernel, cos_m=cos_m, sin_m=sin_m, theta=theta, sinmm=sinmm,
        scale=float(scale))

    # Explicit VMEM budget (v7x: 64 MiB physical / 32 MiB default scoped).
    vmem_need = (2 * tC * E * 4 + 2 * tC * tC * 2 + 2 * tB * E * 4
                 + 8 * tB * tC * 4 + (1 << 20))
    vmem_limit = int(min(max(vmem_need, 4 << 20), 64 << 20))

    per_row = pl.pallas_call(
        kernel,
        out_shape=jax.ShapeDtypeStruct((B, 1), jnp.float32),
        grid=(nB, nC),
        in_specs=[
            pl.BlockSpec((tB, 1), lambda b, c: (b, 0)),    # labels
            pl.BlockSpec((tB, E), lambda b, c: (b, 0)),    # raw embeddings
            pl.BlockSpec((tC, E), lambda b, c: (c, 0)),    # raw (flattened) weight
            pl.BlockSpec((tC, tC), lambda b, c: (0, 0)),   # group membership
        ],
        out_specs=pl.BlockSpec((tB, 1), lambda b, c: (b, 0)),
        scratch_shapes=[
            pltpu.VMEM((tB, 1), jnp.float32),   # running max
            pltpu.VMEM((tB, 1), jnp.float32),   # running sum-exp
            pltpu.VMEM((tB, 1), jnp.float32),   # scaled target logit
        ],
        compiler_params=pltpu.CompilerParams(
            dimension_semantics=("parallel", "arbitrary"),
            vmem_limit_bytes=vmem_limit),
    )(labels2, x, w2, group_mat)

    # TODO(synk): torch CrossEntropyLoss would not accept label == -1 (default
    # ignore_index is -100); we treat -1 as "ignored", matching the margin skip.
    valid = (labels != -1).astype(jnp.float32)
    return jnp.sum(per_row) / jnp.maximum(jnp.sum(valid), 1.0)


def _reference(x, labels, weight, scale, margin):
    """Pure-JAX reference mirroring the torch forward.  The cosine matmul uses the
    same bf16-operand / f32-accumulation scheme as the kernel (a deliberate perf
    choice); all other math is f32."""
    cos_m = math.cos(margin)
    sin_m = math.sin(margin)
    theta = math.cos(math.pi - margin)
    sinmm = math.sin(math.pi - margin) * margin

    x_n = x * lax.rsqrt(jnp.maximum(jnp.sum(x * x, axis=-1, keepdims=True), 1e-24))
    w_n = weight * lax.rsqrt(
        jnp.maximum(jnp.sum(weight * weight, axis=1, keepdims=True), 1e-24))
    w2 = w_n.reshape(-1, weight.shape[-1])
    logits = jnp.dot(x_n.astype(jnp.bfloat16), w2.astype(jnp.bfloat16).T,
                     preferred_element_type=jnp.float32)
    B, C = logits.shape
    onehot = (labels[:, None] == jnp.arange(C)[None, :]) & (labels[:, None] != -1)
    t = logits
    sin_t = jnp.sqrt(jnp.maximum(1.0 - t * t, 0.0))
    final_t = jnp.where(t > theta, t * cos_m - sin_t * sin_m, t - sinmm)
    logits = jnp.where(onehot, final_t, logits) * scale
    logp = jax.nn.log_softmax(logits, axis=-1)
    tgt = jnp.sum(jnp.where(onehot, logp, 0.0), axis=-1)
    valid = labels != -1
    return -jnp.sum(jnp.where(valid, tgt, 0.0)) / jnp.maximum(
        jnp.sum(valid.astype(jnp.float32)), 1.0)


if __name__ == "__main__":
    # config: embedding_size=32, num_classes=[4, 16], scale=64, margin=0.5
    B, E = 8, 32
    num_classes = (4, 16)
    C0, C1 = num_classes[0], num_classes[-1]
    scale, margin = 64.0, 0.5

    key = jax.random.PRNGKey(0)
    kx, kw, kl = jax.random.split(key, 3)
    x = jax.random.normal(kx, (B, E), dtype=jnp.float32)
    # torch.normal(0, 0.01, (num_classes[-1], num_classes[0], embedding_size))
    weight = 0.01 * jax.random.normal(kw, (C1, C0, E), dtype=jnp.float32)
    labels = jax.random.randint(kl, (B,), 0, C1 * C0, dtype=jnp.int32)

    loss = arcface_group_loss(x, labels, weight, scale=scale, margin=margin)
    loss = jax.block_until_ready(loss)

    ref = _reference(x, labels, weight, scale, margin)
    assert jnp.isfinite(loss), loss
    # Tolerance reflects the deliberate bf16 MXU operand rounding (amplified by
    # scale=64 through the softmax); a semantic bug would be orders of magnitude off.
    assert jnp.allclose(loss, ref, rtol=2e-2, atol=5e-2), (loss, ref)
    print("KERNEL_OK")
</pallas_src>

<mosaic_0001>
module attributes {stable_mosaic.version = 11 : i64} {
  func.func @_arcface_kernel(%arg0: i32, %arg1: i32, %arg2: memref<8x1xi32, #tpu.memory_space<vmem>>, %arg3: memref<8x32xf32, #tpu.memory_space<vmem>>, %arg4: memref<64x32xf32, #tpu.memory_space<vmem>>, %arg5: memref<64x64xbf16, #tpu.memory_space<vmem>>, %arg6: memref<8x1xf32, #tpu.memory_space<vmem>>, %arg7: memref<8x1xf32, #tpu.memory_space<vmem>>, %arg8: memref<8x1xf32, #tpu.memory_space<vmem>>, %arg9: memref<8x1xf32, #tpu.memory_space<vmem>>) attributes {dimension_semantics = [#tpu.dimension_semantics<parallel>, #tpu.dimension_semantics<arbitrary>], iteration_bounds = array<i64: 1, 1>, scalar_prefetch = 0 : i64, scratch_operands = 3 : i64, tpu.core_type = #tpu.core_type<tc>, window_params = [{transform_indices = @transform_0, window_bounds = array<i64: 8, 1>}, {transform_indices = @transform_1, window_bounds = array<i64: 8, 32>}, {transform_indices = @transform_2, window_bounds = array<i64: 64, 32>}, {pipeline_mode = #tpu.pipeline_mode<synchronous>, transform_indices = @transform_3, window_bounds = array<i64: 64, 64>}, {transform_indices = @transform_4, window_bounds = array<i64: 8, 1>}]} {
    %c0_i32 = arith.constant 0 : i32
    %0 = arith.cmpi eq, %arg1, %c0_i32 : i32
    %1 = arith.extui %0 : i1 to i32
    %c0_i32_0 = arith.constant 0 : i32
    %2 = arith.cmpi ne, %1, %c0_i32_0 : i32
    scf.if %2 {
      %cst_42 = arith.constant 0xFF800000 : f32
      %93 = vector.broadcast %cst_42 : f32 to vector<8x1xf32>
      %c0_43 = arith.constant 0 : index
      %c0_44 = arith.constant 0 : index
      %94 = vector.load %arg7[%c0_43, %c0_44] : memref<8x1xf32, #tpu.memory_space<vmem>>, vector<8x1xf32>
      tpu.vector_store %arg7[%c0_43, %c0_44], %93 {strides = array<i32>} : memref<8x1xf32, #tpu.memory_space<vmem>>, vector<8x1xf32>,
      %cst_45 = arith.constant 0.000000e+00 : f32
      %95 = vector.broadcast %cst_45 : f32 to vector<8x1xf32>
      %c0_46 = arith.constant 0 : index
      %c0_47 = arith.constant 0 : index
      %96 = vector.load %arg8[%c0_46, %c0_47] : memref<8x1xf32, #tpu.memory_space<vmem>>, vector<8x1xf32>
      tpu.vector_store %arg8[%c0_46, %c0_47], %95 {strides = array<i32>} : memref<8x1xf32, #tpu.memory_space<vmem>>, vector<8x1xf32>,
      %cst_48 = arith.constant 0.000000e+00 : f32
      %97 = vector.broadcast %cst_48 : f32 to vector<8x1xf32>
      %c0_49 = arith.constant 0 : index
      %c0_50 = arith.constant 0 : index
      %98 = vector.load %arg9[%c0_49, %c0_50] : memref<8x1xf32, #tpu.memory_space<vmem>>, vector<8x1xf32>
      tpu.vector_store %arg9[%c0_49, %c0_50], %97 {strides = array<i32>} : memref<8x1xf32, #tpu.memory_space<vmem>>, vector<8x1xf32>,
    } else {
    }
    %c0 = arith.constant 0 : index
    %c0_1 = arith.constant 0 : index
    %3 = vector.load %arg3[%c0, %c0_1] : memref<8x32xf32, #tpu.memory_space<vmem>>, vector<8x32xf32>
    %4 = arith.mulf %3, %3 : vector<8x32xf32>
    %cst = arith.constant dense<0.000000e+00> : vector<8xf32>
    %5 = vector.multi_reduction <add>, %4, %cst [1] : vector<8x32xf32> to vector<8xf32>
    %6 = vector.shape_cast %5 : vector<8xf32> to vector<8x1xf32>
    %cst_2 = arith.constant 1.000000e-24 : f32
    %7 = vector.broadcast %cst_2 : f32 to vector<8x1xf32>
    %8 = arith.maximumf %6, %7 : vector<8x1xf32>
    %9 = math.rsqrt %8 : vector<8x1xf32>
    %10 = vector.broadcast %9 : vector<8x1xf32> to vector<8x32xf32>
    %11 = arith.mulf %3, %10 : vector<8x32xf32>
    %12 = arith.truncf %11 : vector<8x32xf32> to vector<8x32xbf16>
    %c0_3 = arith.constant 0 : index
    %c0_4 = arith.constant 0 : index
    %13 = vector.load %arg4[%c0_3, %c0_4] : memref<64x32xf32, #tpu.memory_space<vmem>>, vector<64x32xf32>
    %14 = arith.mulf %13, %13 : vector<64x32xf32>
    %15 = arith.truncf %14 : vector<64x32xf32> to vector<64x32xbf16>
    %16 = arith.extf %15 : vector<64x32xbf16> to vector<64x32xf32>
    %17 = arith.subf %14, %16 : vector<64x32xf32>
    %18 = arith.truncf %17 : vector<64x32xf32> to vector<64x32xbf16>
    %c0_5 = arith.constant 0 : index
    %c0_6 = arith.constant 0 : index
    %19 = vector.load %arg5[%c0_5, %c0_6] : memref<64x64xbf16, #tpu.memory_space<vmem>>, vector<64x64xbf16>
    %cst_7 = arith.constant dense<0.000000e+00> : vector<64x32xf32>
    %20 = tpu.matmul %19, %15, %cst_7 {dimension_numbers = #tpu.dot_dimension_numbers<[1], [0], [0], [1], [0, 0, 1, 1], [], []>} : vector<64x64xbf16>, vector<64x32xbf16>, vector<64x32xf32> -> vector<64x32xf32>
    %cst_8 = arith.constant dense<0.000000e+00> : vector<64x32xf32>
    %21 = tpu.matmul %19, %18, %cst_8 {dimension_numbers = #tpu.dot_dimension_numbers<[1], [0], [0], [1], [0, 0, 1, 1], [], []>} : vector<64x64xbf16>, vector<64x32xbf16>, vector<64x32xf32> -> vector<64x32xf32>
    %22 = arith.addf %20, %21 : vector<64x32xf32>
    %cst_9 = arith.constant 1.000000e-24 : f32
    %23 = vector.broadcast %cst_9 : f32 to vector<64x32xf32>
    %24 = arith.maximumf %22, %23 : vector<64x32xf32>
    %25 = math.rsqrt %24 : vector<64x32xf32>
    %26 = arith.mulf %13, %25 : vector<64x32xf32>
    %27 = arith.truncf %26 : vector<64x32xf32> to vector<64x32xbf16>
    %cst_10 = arith.constant dense<0.000000e+00> : vector<8x64xf32>
    %28 = tpu.matmul %12, %27, %cst_10 {dimension_numbers = #tpu.dot_dimension_numbers<[1], [1], [0], [0], [0, 0, 1, 0], [], []>} : vector<8x32xbf16>, vector<64x32xbf16>, vector<8x64xf32> -> vector<8x64xf32>
    %c0_11 = arith.constant 0 : index
    %c0_12 = arith.constant 0 : index
    %29 = vector.load %arg2[%c0_11, %c0_12] : memref<8x1xi32, #tpu.memory_space<vmem>>, vector<8x1xi32>
    %30 = tpu.iota {dimensions = array<i32: 1>} : vector<8x64xi32>
    %c64_i32 = arith.constant 64 : i32
    %31 = arith.muli %arg1, %c64_i32 : i32
    %32 = vector.broadcast %31 : i32 to vector<8x64xi32>
    %33 = arith.addi %30, %32 : vector<8x64xi32>
    %34 = vector.broadcast %29 : vector<8x1xi32> to vector<8x64xi32>
    %35 = arith.cmpi eq, %33, %34 : vector<8x64xi32>
    %cst_13 = arith.constant 0.000000e+00 : f32
    %36 = vector.broadcast %cst_13 : f32 to vector<8x64xf32>
    %37 = arith.select %35, %28, %36 : vector<8x64xi1>, vector<8x64xf32>
    %cst_14 = arith.constant dense<0.000000e+00> : vector<8xf32>
    %38 = vector.multi_reduction <add>, %37, %cst_14 [1] : vector<8x64xf32> to vector<8xf32>
    %39 = vector.shape_cast %38 : vector<8xf32> to vector<8x1xf32>
    %40 = arith.extui %35 : vector<8x64xi1> to vector<8x64xi32>
    %41 = arith.sitofp %40 : vector<8x64xi32> to vector<8x64xf32>
    %cst_15 = arith.constant dense<0.000000e+00> : vector<8xf32>
    %42 = vector.multi_reduction <add>, %41, %cst_15 [1] : vector<8x64xf32> to vector<8xf32>
    %43 = vector.shape_cast %42 : vector<8xf32> to vector<8x1xf32>
    %cst_16 = arith.constant 0.000000e+00 : f32
    %44 = vector.broadcast %cst_16 : f32 to vector<8x1xf32>
    %45 = arith.cmpf ogt, %43, %44 : vector<8x1xf32>
    %46 = arith.mulf %39, %39 : vector<8x1xf32>
    %cst_17 = arith.constant 1.000000e+00 : f32
    %47 = vector.broadcast %cst_17 : f32 to vector<8x1xf32>
    %48 = arith.subf %47, %46 : vector<8x1xf32>
    %cst_18 = arith.constant 0.000000e+00 : f32
    %49 = vector.broadcast %cst_18 : f32 to vector<8x1xf32>
    %50 = arith.maximumf %48, %49 : vector<8x1xf32>
    %51 = math.sqrt %50 : vector<8x1xf32>
    %cst_19 = arith.constant 0.87758255 : f32
    %52 = vector.broadcast %cst_19 : f32 to vector<8x1xf32>
    %53 = arith.mulf %39, %52 : vector<8x1xf32>
    %cst_20 = arith.constant 0.47942555 : f32
    %54 = vector.broadcast %cst_20 : f32 to vector<8x1xf32>
    %55 = arith.mulf %51, %54 : vector<8x1xf32>
    %56 = arith.subf %53, %55 : vector<8x1xf32>
    %cst_21 = arith.constant -0.87758255 : f32
    %57 = vector.broadcast %cst_21 : f32 to vector<8x1xf32>
    %58 = arith.cmpf ogt, %39, %57 : vector<8x1xf32>
    %cst_22 = arith.constant 0.239712775 : f32
    %59 = vector.broadcast %cst_22 : f32 to vector<8x1xf32>
    %60 = arith.subf %39, %59 : vector<8x1xf32>
    %61 = arith.select %58, %56, %60 : vector<8x1xi1>, vector<8x1xf32>
    %62 = vector.shape_cast %61 : vector<8x1xf32> to vector<8x1xf32>
    %63 = vector.broadcast %62 : vector<8x1xf32> to vector<8x64xf32>
    %64 = arith.select %35, %63, %28 : vector<8x64xi1>, vector<8x64xf32>
    %cst_23 = arith.constant 6.400000e+01 : f32
    %65 = vector.broadcast %cst_23 : f32 to vector<8x64xf32>
    %66 = arith.mulf %64, %65 : vector<8x64xf32>
    %c0_24 = arith.constant 0 : index
    %c0_25 = arith.constant 0 : index
    %67 = vector.load %arg7[%c0_24, %c0_25] : memref<8x1xf32, #tpu.memory_space<vmem>>, vector<8x1xf32>
    %cst_26 = arith.constant dense<0xFF800000> : vector<8xf32>
    %68 = vector.multi_reduction <maximumf>, %66, %cst_26 [1] : vector<8x64xf32> to vector<8xf32>
    %69 = vector.shape_cast %68 : vector<8xf32> to vector<8x1xf32>
    %70 = arith.maximumf %67, %69 : vector<8x1xf32>
    %71 = arith.subf %67, %70 : vector<8x1xf32>
    %72 = math.exp %71 : vector<8x1xf32>
    %c0_27 = arith.constant 0 : index
    %c0_28 = arith.constant 0 : index
    %73 = vector.load %arg8[%c0_27, %c0_28] : memref<8x1xf32, #tpu.memory_space<vmem>>, vector<8x1xf32>
    %74 = arith.mulf %72, %73 : vector<8x1xf32>
    %75 = vector.broadcast %70 : vector<8x1xf32> to vector<8x64xf32>
    %76 = arith.subf %66, %75 : vector<8x64xf32>
    %77 = math.exp %76 : vector<8x64xf32>
    %cst_29 = arith.constant dense<0.000000e+00> : vector<8xf32>
    %78 = vector.multi_reduction <add>, %77, %cst_29 [1] : vector<8x64xf32> to vector<8xf32>
    %79 = vector.shape_cast %78 : vector<8xf32> to vector<8x1xf32>
    %80 = arith.addf %74, %79 : vector<8x1xf32>
    %c0_30 = arith.constant 0 : index
    %c0_31 = arith.constant 0 : index
    %81 = vector.load %arg8[%c0_30, %c0_31] : memref<8x1xf32, #tpu.memory_space<vmem>>, vector<8x1xf32>
    tpu.vector_store %arg8[%c0_30, %c0_31], %80 {strides = array<i32>} : memref<8x1xf32, #tpu.memory_space<vmem>>, vector<8x1xf32>,
    %c0_32 = arith.constant 0 : index
    %c0_33 = arith.constant 0 : index
    %82 = vector.load %arg7[%c0_32, %c0_33] : memref<8x1xf32, #tpu.memory_space<vmem>>, vector<8x1xf32>
    tpu.vector_store %arg7[%c0_32, %c0_33], %70 {strides = array<i32>} : memref<8x1xf32, #tpu.memory_space<vmem>>, vector<8x1xf32>,
    %c0_34 = arith.constant 0 : index
    %c0_35 = arith.constant 0 : index
    %83 = vector.load %arg9[%c0_34, %c0_35] : memref<8x1xf32, #tpu.memory_space<vmem>>, vector<8x1xf32>
    %cst_36 = arith.constant 6.400000e+01 : f32
    %84 = vector.broadcast %cst_36 : f32 to vector<8x1xf32>
    %85 = arith.mulf %61, %84 : vector<8x1xf32>
    %cst_37 = arith.constant 0.000000e+00 : f32
    %86 = vector.broadcast %cst_37 : f32 to vector<8x1xf32>
    %87 = arith.select %45, %85, %86 : vector<8x1xi1>, vector<8x1xf32>
    %88 = arith.addf %83, %87 : vector<8x1xf32>
    %c0_38 = arith.constant 0 : index
    %c0_39 = arith.constant 0 : index
    %89 = vector.load %arg9[%c0_38, %c0_39] : memref<8x1xf32, #tpu.memory_space<vmem>>, vector<8x1xf32>
    tpu.vector_store %arg9[%c0_38, %c0_39], %88 {strides = array<i32>} : memref<8x1xf32, #tpu.memory_space<vmem>>, vector<8x1xf32>,
    %c0_i32_40 = arith.constant 0 : i32
    %90 = arith.cmpi eq, %arg1, %c0_i32_40 : i32
    %91 = arith.extui %90 : i1 to i32
    %c0_i32_41 = arith.constant 0 : i32
    %92 = arith.cmpi ne, %91, %c0_i32_41 : i32
    scf.if %92 {
      %c0_42 = arith.constant 0 : index
      %c0_43 = arith.constant 0 : index
      %93 = vector.load %arg7[%c0_42, %c0_43] : memref<8x1xf32, #tpu.memory_space<vmem>>, vector<8x1xf32>
      %c0_44 = arith.constant 0 : index
      %c0_45 = arith.constant 0 : index
      %94 = vector.load %arg8[%c0_44, %c0_45] : memref<8x1xf32, #tpu.memory_space<vmem>>, vector<8x1xf32>
      %95 = math.log %94 : vector<8x1xf32>
      %96 = arith.addf %93, %95 : vector<8x1xf32>
      %c0_46 = arith.constant 0 : index
      %c0_47 = arith.constant 0 : index
      %97 = vector.load %arg2[%c0_46, %c0_47] : memref<8x1xi32, #tpu.memory_space<vmem>>, vector<8x1xi32>
      %c-1_i32 = arith.constant -1 : i32
      %98 = vector.broadcast %c-1_i32 : i32 to vector<8x1xi32>
      %99 = arith.cmpi ne, %97, %98 : vector<8x1xi32>
      %100 = arith.extui %99 : vector<8x1xi1> to vector<8x1xi32>
      %101 = arith.sitofp %100 : vector<8x1xi32> to vector<8x1xf32>
      %c0_48 = arith.constant 0 : index
      %c0_49 = arith.constant 0 : index
      %102 = vector.load %arg9[%c0_48, %c0_49] : memref<8x1xf32, #tpu.memory_space<vmem>>, vector<8x1xf32>
      %103 = arith.subf %96, %102 : vector<8x1xf32>
      %104 = arith.mulf %103, %101 : vector<8x1xf32>
      %c0_50 = arith.constant 0 : index
      %c0_51 = arith.constant 0 : index
      %105 = vector.load %arg6[%c0_50, %c0_51] : memref<8x1xf32, #tpu.memory_space<vmem>>, vector<8x1xf32>
      tpu.vector_store %arg6[%c0_50, %c0_51], %104 {strides = array<i32>} : memref<8x1xf32, #tpu.memory_space<vmem>>, vector<8x1xf32>,
    } else {
    }
    return
  }
  func.func @transform_0(%arg0: i32, %arg1: i32) -> (i32, i32) {
    %c0_i32 = arith.constant 0 : i32
    %c0_i32_0 = arith.constant 0 : i32
    return %arg0, %c0_i32 : i32, i32
  }
  func.func @transform_1(%arg0: i32, %arg1: i32) -> (i32, i32) {
    %c0_i32 = arith.constant 0 : i32
    %c0_i32_0 = arith.constant 0 : i32
    return %arg0, %c0_i32 : i32, i32
  }
  func.func @transform_2(%arg0: i32, %arg1: i32) -> (i32, i32) {
    %c0_i32 = arith.constant 0 : i32
    %c0_i32_0 = arith.constant 0 : i32
    return %arg1, %c0_i32 : i32, i32
  }
  func.func @transform_3(%arg0: i32, %arg1: i32) -> (i32, i32) {
    %c0_i32 = arith.constant 0 : i32
    %c0_i32_0 = arith.constant 0 : i32
    %c0_i32_1 = arith.constant 0 : i32
    return %c0_i32, %c0_i32_0 : i32, i32
  }
  func.func @transform_4(%arg0: i32, %arg1: i32) -> (i32, i32) {
    %c0_i32 = arith.constant 0 : i32
    %c0_i32_0 = arith.constant 0 : i32
    return %arg0, %c0_i32 : i32, i32
  }
}

</mosaic_0001>

<bundles_post_ra>
// kernel: tpu_custom_call.1
= control target key start
LH: loop header
LB: loop body
LE: loop exit
PB: predicated region body
PF: predicated region fallthrough
CT: control target
= control target key end

     0   :  { %vm104_vm0 = vcmask 523264   ;;  %vm28_vm1 = vcmask 261120   ;;  %v543_v47 = vmov 0.0   ;;  %vm544_vm2 = vmmov 0   ;;  %s703_s2 = inlined_call_operand.vmem [shape: f32[64,32], index: 2, kind: input, shape index: {}]   ;;  %s704_s3 = inlined_call_operand.vmem [shape: bf16[64,64], index: 3, kind: input, shape index: {}]   ;;  %s705_s1 = inlined_call_operand.vmem [shape: f32[8,32], index: 1, kind: input, shape index: {}]   ;;  %s706_s0 = inlined_call_operand.vmem [shape: s32[8,1], index: 0, kind: input, shape index: {}]   ;;  %s707_s4 = inlined_call_operand.vmem [shape: f32[8,1], index: 4, kind: output, shape index: {}]  }
   0x1   :  { %v575_v0 = vld [vmem:[%s703_s2] sm:$0xff]  ;;  %v580_v1 = vld [vmem:[%s703_s2 + $0x8] sm:$0xff]  ;;  %v585_v2 = vld [vmem:[%s703_s2 + $0x10] sm:$0xff]  ;;  %487 = vmatprep.subr.bf16.mxu1 %v543_v47  ;;  %495 = vmatprep.mubr.msk.bf16.mxu1 %vm544_vm2, %v543_v47  ;;  %v545_v48 = vmov 0   ;;  %vm22_vm4 = vcmask 7168  }
   0x2   :  { %v44_v3 = vmul.f32 %v575_v0, %v575_v0  ;;  %v45_v4 = vmul.f32 %v580_v1, %v580_v1  ;;  %v594_v5 = vld [vmem:[%s703_s2 + $0x18] sm:$0xff]  ;;  %v46_v6 = vmul.f32 %v585_v2, %v585_v2  ;;  %v601_v7 = vld [vmem:[%s703_s2 + $0x20] sm:$0xff]  ;;  %v606_v8 = vld [vmem:[%s703_s2 + $0x28] sm:$0xff]  ;;  %511 = vset.pattern.permute.xlu0 %v545_v48  ;;  %512 = vset.pattern.permute.xlu1 %v545_v48 }
   0x3   :  { %v47_v9 = vmul.f32 %v594_v5, %v594_v5  ;;  %v48_v10 = vmul.f32 %v601_v7, %v601_v7  ;;  %v49_v11 = vmul.f32 %v606_v8, %v606_v8  ;;  %v617_v12 = vld [vmem:[%s703_s2 + $0x30] sm:$0xff]  ;;  %v622_v13 = vld [vmem:[%s703_s2 + $0x38] sm:$0xff]  ;;  %v513_v17 = vld [vmem:[%s704_s3] sm:$0xff]   ;;  %25 = vst.msk [vmem:[#allocation4] sm:$0xff] %vm22_vm4, %v543_v47 }
   0x4   :  { %v52_v14 = vpack.c.bf16 %v45_v4, %v44_v3  ;;  %v50_v15 = vmul.f32 %v617_v12, %v617_v12  ;;  %v51_v16 = vmul.f32 %v622_v13, %v622_v13  ;;  %463 = vmatprep.mubr.msk.bf16.mxu0 %vm104_vm0, %v513_v17  ;;  %v635_v27 = vld [vmem:[%s705_s1] sm:$0xff]  ;;  %v514_v44 = vld [vmem:[%s704_s3 + $0x8] sm:$0xff]   ;;  %v515_v45 = vld [vmem:[%s704_s3 + $0x10] sm:$0xff]   ;;  %24 = vst.msk [vmem:[#allocation3] sm:$0xff] %vm22_vm4, %v543_v47 }
   0x5   :  { %v53_v18 = vpack.c.bf16 %v47_v9, %v46_v6  ;;  %v54_v19 = vpack.c.bf16 %v49_v11, %v48_v10  ;;  %v27_v37 = vmul.f32 %v635_v27, %v635_v27  ;;  %v516_v46 = vld [vmem:[%s704_s3 + $0x18] sm:$0xff]   ;;  %v661_v49 = vld [vmem:[%s706_s0] sm:$0xff] }
   0x6   :  { %v56_v20 = vunpack.c.l.bf16 %v52_v14  ;;  %v57_v21 = vunpack.c.h.bf16 %v52_v14  ;;  %v55_v22 = vpack.c.bf16 %v51_v16, %v50_v15  ;;  %vm407_vm9 = vcmp.ne.s32.totalorder %v661_v49, 4294967295 }
   0x7   :  { %v58_v23 = vunpack.c.l.bf16 %v53_v18  ;;  %v59_v24 = vunpack.c.h.bf16 %v53_v18  ;;  %v60_v25 = vunpack.c.l.bf16 %v54_v19  ;;  %v61_v26 = vunpack.c.h.bf16 %v54_v19 }
   0x8   :  { %v64_v28 = vsub.f32 %v44_v3, %v56_v20  ;;  %v65_v29 = vsub.f32 %v45_v4, %v57_v21  ;;  %v62_v32 = vunpack.c.l.bf16 %v55_v22  ;;  %v63_v33 = vunpack.c.h.bf16 %v55_v22 }
   0x9   :  { %v66_v30 = vsub.f32 %v46_v6, %v58_v23  ;;  %v67_v31 = vsub.f32 %v47_v9, %v59_v24  ;;  %v68_v35 = vsub.f32 %v48_v10, %v60_v25  ;;  %v69_v36 = vsub.f32 %v49_v11, %v61_v26 }
   0xa   :  { %v72_v34 = vpack.c.bf16 %v65_v29, %v64_v28  ;;  %v29_v39 = vsel %vm28_vm1, %v27_v37, 0.0  ;;  %v70_v41 = vsub.f32 %v50_v15, %v62_v32  ;;  %v71_v42 = vsub.f32 %v51_v16, %v63_v33 }
   0xb   :  { %v73_v38 = vpack.c.bf16 %v67_v31, %v66_v30  ;;  %30 = vadd.xlane.f32.xlu0 %v29_v39  ;;  %v74_v40 = vpack.c.bf16 %v69_v36, %v68_v35  ;;  %v331_v32 = vlaneseq }
   0xc   :  { %455 = vmatprep.subr.bf16.mxu0 %v72_v34  ;;  %v75_v43 = vpack.c.bf16 %v71_v42, %v70_v41  ;;  %v546_v42 = vmov -inf  }
   0xd   :  { %456 = vmatpush3.bf16.msra.mxu0 %v72_v34  ;;  %v332_v33 = vand.u32 127, %v331_v32  ;;  %23 = vst.msk [vmem:[#allocation2] sm:$0xff] %vm22_vm4, %v546_v42 }
   0xe   :  { %457 = vmatprep.subr.bf16.mxu0 %v73_v38 }
  0x11   :  { %458 = vmatpush3.bf16.msra.mxu0 %v73_v38 }
  0x12   :  { %459 = vmatprep.subr.bf16.mxu0 %v74_v40 }
  0x15   :  { %460 = vmatpush3.bf16.msra.mxu0 %v74_v40 }
  0x16   :  { %461 = vmatprep.subr.bf16.mxu0 %v75_v43 }
  0x19   :  { %462 = vmatpush3.bf16.msra.mxu0 %v75_v43 }
  0x1a   :  { %471 = vmatprep.subr.bf16.mxu0 %v52_v14 }
  0x1c   :  { %464 = vmatmul.mubr.msk.bf16.vlgmr.msra.gmra.mrb[0].mxu0 %vm104_vm0, %v514_v44 }
  0x1d   :  { %472 = vmatpush3.bf16.msra.mxu0 %v52_v14  ;;  %467 = vmatprep.mubr.msk.bf16.mxu0 %vm104_vm0, %v515_v45 }
  0x1e   :  { %473 = vmatprep.subr.bf16.mxu0 %v53_v18 }
  0x21   :  { %474 = vmatpush3.bf16.msra.mxu0 %v53_v18  ;;  %337 = vperm.xlu0 %511, %v661_v49  }
  0x22   :  { %475 = vmatprep.subr.bf16.mxu0 %v54_v19 }
  0x24   :  { %468 = vmatmul.mubr.msk.bf16.gmra.mrb[4].mxu0 %vm104_vm0, %v516_v46 }
  0x25   :  { %476 = vmatpush3.bf16.msra.mxu0 %v54_v19  ;;  %479 = vmatprep.mubr.msk.bf16.mxu0 %vm104_vm0, %v513_v17 }
  0x26   :  { %477 = vmatprep.subr.bf16.mxu0 %v55_v22 }
  0x29   :  { %478 = vmatpush3.bf16.msra.mxu0 %v55_v22 }
  0x2c   :  { %480 = vmatmul.mubr.msk.bf16.vlgmr.msra.gmra.mrb[0].mxu0 %vm104_vm0, %v514_v44 }
  0x2d   :  { %483 = vmatprep.mubr.msk.bf16.mxu0 %vm104_vm0, %v515_v45 }
  0x34   :  { %484 = vmatmul.mubr.msk.bf16.gmra.mrb[4].mxu0 %vm104_vm0, %v516_v46 }
  0xff   :  { %v481_v50 = vpop.f32.mrb[0].mxu0 }
 0x100   :  { %v249_v51 = vmax.f32 %v481_v50, 1e-24  ;;  %v216_v52 = vpop.f32.mrb[1].mxu0 }
 0x101   :  { %v247_v53 = vmax.f32 %v216_v52, 1e-24  ;;  %v482_v54 = vpop.f32.mrb[2].mxu0 }
 0x102   :  { %517 = vrsqrt.f32 %v249_v51  ;;  %v250_v55 = vmax.f32 %v482_v54, 1e-24  ;;  %v219_v56 = vpop.f32.mrb[3].mxu0 }
 0x103   :  { %519 = vrsqrt.f32 %v247_v53  ;;  %v248_v57 = vmax.f32 %v219_v56, 1e-24 }
 0x104   :  { %521 = vrsqrt.f32 %v250_v55 }
 0x105   :  { %523 = vrsqrt.f32 %v248_v57 }
 0x107   :  { %v485_v58 = vpop.f32.mrb[4].mxu0 }
 0x108   :  { %v253_v59 = vmax.f32 %v485_v58, 1e-24  ;;  %v232_v60 = vpop.f32.mrb[5].mxu0 }
 0x109   :  { %v251_v61 = vmax.f32 %v232_v60, 1e-24  ;;  %v486_v62 = vpop.f32.mrb[6].mxu0  ;;  %v393_v60 = vld [vmem:[#allocation4] sm:$0xff] }
 0x10a   :  { %525 = vrsqrt.f32 %v253_v59  ;;  %v254_v63 = vmax.f32 %v486_v62, 1e-24  ;;  %v235_v3 = vpop.f32.mrb[7].mxu0 }
 0x10b   :  { %527 = vrsqrt.f32 %v251_v61  ;;  %v252_v4 = vmax.f32 %v235_v3, 1e-24 }
 0x10c   :  { %v518_v6 = vpop.eup %517  ;;  %529 = vrsqrt.f32 %v254_v63 }
 0x10d   :  { %v520_v9 = vpop.eup %519  ;;  %531 = vrsqrt.f32 %v252_v4  ;;  %v265_v14 = vmul.f32 %v518_v6, %v585_v2 }
 0x10e   :  { %v522_v10 = vpop.eup %521  ;;  %v263_v16 = vmul.f32 %v520_v9, %v575_v0  ;;  %v368_v9 = vld [vmem:[#allocation2] sm:$0xff] }
 0x10f   :  { %v524_v11 = vpop.eup %523  ;;  %v266_v15 = vmul.f32 %v522_v10, %v594_v5  ;;  %v31_v5 = vpop.xlane.xlu0 %30 }
 0x110   :  { %v264_v17 = vmul.f32 %v524_v11, %v580_v1  ;;  %v32_v29 = vmax.f32 %v31_v5, 1e-24 }
 0x111   :  { %v272_v18 = vpack.c.bf16 %v266_v15, %v265_v14 }
 0x112   :  { %v271_v19 = vpack.c.bf16 %v264_v17, %v263_v16  ;;  %533 = vrsqrt.f32 %v32_v29 }
 0x113   :  { %v282_v30 = vsel %vm28_vm1, %v272_v18, 0  ;;  %v338_v34 = vpop.permute.xlu0 %337 }
 0x114   :  { %v526_v20 = vpop.eup %525  ;;  %v279_v21 = vsel %vm28_vm1, %v271_v19, 0  ;;  %vm339_vm3 = vcmp.eq.s32.totalorder %v332_v33, %v338_v34 }
 0x115   :  { %v528_v22 = vpop.eup %527  ;;  %488 = vmatpush3.bf16.xpose.msra.mxu1 %v279_v21  ;;  %v269_v25 = vmul.f32 %v526_v20, %v617_v12  ;;  %v431_v35 = vsel %vm339_vm3, 1.0, %v543_v47 }
 0x116   :  { %v530_v23 = vpop.eup %529  ;;  %489 = vmatprep.subr.bf16.mxu1 %v543_v47  ;;  %v267_v0 = vmul.f32 %v528_v22, %v601_v7  ;;  %v346_v36 = vsel %vm104_vm0, %v431_v35, 0.0  ;;  %v376_v22 = vld [vmem:[#allocation3] sm:$0xff] }
 0x117   :  { %v532_v24 = vpop.eup %531  ;;  %v270_v2 = vmul.f32 %v530_v23, %v622_v13  ;;  %347 = vadd.xlane.f32.xlu0 %v346_v36 }
 0x118   :  { %v268_v1 = vmul.f32 %v532_v24, %v606_v8 }
 0x119   :  { %v274_v26 = vpack.c.bf16 %v270_v2, %v269_v25 }
 0x11a   :  { %v273_v28 = vpack.c.bf16 %v268_v1, %v267_v0 }
 0x11b   :  { %v288_v13 = vsel %vm28_vm1, %v274_v26, 0 }
 0x11c   :  { %v285_v31 = vsel %vm28_vm1, %v273_v28, 0  ;;  %v534_v12 = vpop.eup %533  ;;  %v433_v28 = vsel %vm407_vm9, 1.0, %v543_v47 }
 0x11d   :  { %490 = vmatpush3.bf16.xpose.msra.mxu1 %v282_v30  ;;  %v34_v7 = vmul.f32 %v534_v12, %v635_v27 }
 0x11e   :  { %491 = vmatprep.subr.bf16.mxu1 %v543_v47 }
 0x11f   :  { %v35_v8 = vpack.c.bf16 %v34_v7, %v34_v7 }
 0x125   :  { %492 = vmatpush3.bf16.xpose.msra.mxu1 %v285_v31 }
 0x126   :  { %493 = vmatprep.subr.bf16.mxu1 %v543_v47 }
 0x12d   :  { %494 = vmatpush3.bf16.xpose.msra.mxu1 %v288_v13 }
 0x134   :  { %496 = vmatmul.mubr.msk.bf16.vlgmr.msra.gmra.mrb[0].mxu1 %vm28_vm1, %v35_v8 }
 0x1a4   :  { %v348_v58 = vpop.xlane.xlu0 %347 }
 0x1a5   :  { %vm349_vm8 = vcmp.gt.f32.partialorder %v348_v58, 0.0 }
 0x207   :  { %v324_v37 = vpop.f32.mrb[0].mxu1 }
 0x208   :  { %v497_v38 = vpop.f32.mrb[1].mxu1  ;;  %v340_v39 = vsel %vm339_vm3, %v324_v37, 0.0 }
 0x209   :  { %v327_v40 = vpop.f32.mrb[2].mxu1  ;;  %v341_v27 = vsel %vm104_vm0, %v340_v39, 0.0 }
 0x20a   :  { %v498_v41 = vpop.f32.mrb[3].mxu1  ;;  %342 = vadd.xlane.f32.xlu1 %v341_v27 }
 0x297   :  { %v343_v43 = vpop.xlane.xlu1 %342 }
 0x298   :  { %v350_v44 = vmul.f32 %v343_v43, %v343_v43  ;;  %v360_v54 = vmul.f32 0.87758255, %v343_v43  ;;  %v432_v57 = vadd.f32 -0.23971277, %v343_v43  ;;  %vm363_vm7 = vcmp.gt.f32.partialorder %v343_v43, -0.87758255 }
 0x29a   :  { %v351_v45 = vsub.f32 1.0, %v350_v44 }
 0x29c   :  { %v352_v46 = vmax.f32 %v351_v45, 0.0 }
 0x29e   :  { %535 = vrsqrt.f32 %v352_v46  ;;  %vm355_vm5 = vcmp.eq.f32.partialorder %v352_v46, inf  ;;  %v358_v51 = vand.u32 2147483648, %v352_v46  ;;  %vm357_vm6 = vcmp.eq.f32.partialorder %v352_v46, 0.0 }
 0x2a8   :  { %v536_v48 = vpop.eup %535 }
 0x2a9   :  { %v354_v50 = vmul.f32 %v536_v48, %v352_v46 }
 0x2ab   :  { %v356_v52 = vsel %vm355_vm5, %v352_v46, %v354_v50 }
 0x2ac   :  { %v359_v53 = vsel %vm357_vm6, %v358_v51, %v356_v52 }
 0x2ad   :  { %v361_v55 = vmul.f32 0.47942555, %v359_v53 }
 0x2af   :  { %v362_v56 = vsub.f32 %v360_v54, %v361_v55 }
 0x2b1   :  { %v365_v59 = vsel %vm363_vm7, %v362_v56, %v432_v57 }
 0x2b2   :  { %v394_v61 = vmul.f32 64.0, %v365_v59  ;;  %v366_v62 = vsel %vm339_vm3, %v365_v59, %v324_v37 }
 0x2b3   :  { %v367_v63 = vmul.f32 64.0, %v366_v62 }
 0x2b4   :  { %v395_v3 = vsel %vm349_vm8, %v394_v61, 0.0 }
 0x2b5   :  { %v396_v4 = vadd.f32 %v395_v3, %v393_v60  ;;  %v369_v6 = vsel %vm104_vm0, %v367_v63, -inf }
 0x2b6   :  { %370 = vmax.xlane.f32.xlu1 %v369_v6 }
 0x2b7   :  { %397 = vst.msk [vmem:[#allocation4] sm:$0xff] %vm22_vm4, %v396_v4 }
 0x2be   :  { %v410_v29 = vld [vmem:[#allocation4] sm:$0xff] }
 0x343   :  { %v371_v10 = vpop.xlane.xlu1 %370 }
 0x344   :  { %v372_v11 = vmax.f32 %v368_v9, %v371_v10 }
 0x346   :  { %v373_v14 = vsub.f32 %v368_v9, %v372_v11  ;;  %392 = vst.msk [vmem:[#allocation2] sm:$0xff] %vm22_vm4, %v372_v11  ;;  %380 = vperm.xlu1 %512, %v372_v11  }
 0x348   :  { %v374_v20 = vmul.f32 1.442695, %v373_v14 }
 0x34d   :  { %v401_v1 = vld [vmem:[#allocation2] sm:$0xff] }
 0x3c5   :  { %v381_v15 = vpop.permute.xlu1 %380 }
 0x3c6   :  { %v383_v16 = vsub.f32 %v367_v63, %v381_v15 }
 0x3c8   :  { %v384_v17 = vmul.f32 1.442695, %v383_v16 }
 0x3ca   :  { %537 = vpow2.f32 %v384_v17 }
 0x3cb   :  { %539 = vpow2.f32 %v374_v20 }
 0x3d4   :  { %v538_v18 = vpop.eup %537 }
 0x3d5   :  { %v386_v19 = vsel %vm104_vm0, %v538_v18, 0.0  ;;  %v540_v21 = vpop.eup %539 }
 0x3d6   :  { %387 = vadd.xlane.f32.xlu1 %v386_v19  ;;  %v377_v23 = vmul.f32 %v540_v21, %v376_v22 }
 0x463   :  { %v388_v24 = vpop.xlane.xlu1 %387 }
 0x464   :  { %v389_v25 = vadd.f32 %v388_v24, %v377_v23 }
 0x466   :  { %391 = vst.msk [vmem:[#allocation3] sm:$0xff] %vm22_vm4, %v389_v25 }
 0x46d   :  { %v402_v2 = vld [vmem:[#allocation3] sm:$0xff] }
 0x46e   :  { %541 = vlog2.f32 %v402_v2 }
 0x478   :  { %v542_v5 = vpop.eup %541 }
 0x479   :  { %v404_v0 = vmul.f32 0.6931472, %v542_v5 }
 0x47b   :  { %v405_v26 = vadd.f32 %v404_v0, %v401_v1 }
 0x47d   :  { %v411_v30 = vsub.f32 %v405_v26, %v410_v29 }
 0x47f   :  { %v412_v31 = vmul.f32 %v433_v28, %v411_v30 }
 0x481   :  { %413 = vst.msk [vmem:[%s707_s4] sm:$0xff] %vm22_vm4, %v412_v31 }

</bundles_post_ra>
